<compile_context>
chip_gen: v6e
topology: v6e:2x2x1
jax: 0.10.0
libtpu: 0.0.40
codegen_flags: <defaults>
</compile_context>

<pallas_src>
import functools

import numpy as np
import jax
import jax.numpy as jnp
from jax import lax
from jax.experimental import pallas as pl
from jax.experimental.pallas import tpu as pltpu

LANES = 128


def _round_up(x, m):
    return ((x + m - 1) // m) * m


def _gener_embedding_kernel(*refs, apply_dropout, keep_prob):
    """One grid step.

    refs = (ids_ref[, rnd_ref], tab_ref, out_ref)
      ids_ref : (TN, 8) int32   -- cols 0..2 = offset grid/time/event ids, -1 pad
      rnd_ref : (TN, EPAD) f32  -- uniform(0,1) randoms (only when dropout on)
      tab_ref : (KPAD, EPAD) f32 -- fused (grid|time|event) table, resident
      out_ref : (TN, EPAD) f32
    """
    if apply_dropout:
        ids_ref, rnd_ref, tab_ref, out_ref = refs
    else:
        ids_ref, tab_ref, out_ref = refs

    tn = out_ref.shape[0]
    kdim = tab_ref.shape[0]

    ids = ids_ref[...]                                     # (TN, 8) int32
    iota = lax.broadcasted_iota(jnp.int32, (tn, kdim), 1)  # (TN, KPAD)

    # Fused "3-hot" row: the three vocab ranges are disjoint after the wrapper
    # adds offsets, so an OR of the matches is exact; single cast to the table
    # dtype feeds the MXU.
    hot = ((ids[:, 0:1] == iota)
           | (ids[:, 1:2] == iota)
           | (ids[:, 2:3] == iota)).astype(tab_ref.dtype)

    # One MXU pass = grid + time + event lookups summed (f32 accumulation).
    x = jnp.dot(hot, tab_ref[...], preferred_element_type=jnp.float32)

    if apply_dropout:
        inv_keep = float(1.0 / keep_prob)
        x = jnp.where(rnd_ref[...] < np.float32(keep_prob), x * inv_keep, 0.0)

    out_ref[...] = x.astype(out_ref.dtype)


def gener_embedding_forward(data, params, *, train_mode=0, dropout_p=0.1,
                            training=True, rng_key=None, block_rows=1024):
    """data: dict with 'grid', 'timestamp', 'event' int32 arrays of shape (B, S).
    params: dict with 'grid_tab', 'time_tab', 'event_tab' float32 (vocab, E).
    Returns (B, S, E) float32, matching the PyTorch module's forward.
    """
    train_mode = str(train_mode)
    if train_mode != '0':
        # TODO(synk): PyTorch branch train_mode=='1' only sets `a = 1` and then
        # references an undefined `x`; there is nothing meaningful to translate.
        raise NotImplementedError("train_mode != '0' has no defined forward path")

    assert 0.0 <= dropout_p < 1.0, "dropout_p must be in [0, 1)"

    grid_tab = params['grid_tab']
    time_tab = params['time_tab']
    event_tab = params['event_tab']
    Vg, E = grid_tab.shape
    Vt = time_tab.shape[0]
    Ve = event_tab.shape[0]
    assert time_tab.shape[1] == E and event_tab.shape[1] == E
    assert E <= LANES, "embed_size > 128 not supported by this tiling"

    B, S = data['grid'].shape
    N = B * S

    # ---- fused, lane-dense table: (KPAD, EPAD) ----
    Vtot = Vg + Vt + Ve
    KPAD = _round_up(Vtot, LANES)
    EPAD = _round_up(max(E, LANES), LANES)
    fused_tab = jnp.zeros((KPAD, EPAD), jnp.float32)
    fused_tab = fused_tab.at[:Vg, :E].set(grid_tab.astype(jnp.float32))
    fused_tab = fused_tab.at[Vg:Vg + Vt, :E].set(time_tab.astype(jnp.float32))
    fused_tab = fused_tab.at[Vg + Vt:Vtot, :E].set(event_tab.astype(jnp.float32))

    # ---- packed, offset ids: (NPAD, 8), padding rows = -1 (match nothing) ----
    TN = min(block_rows, _round_up(N, 8))
    NPAD = _round_up(N, TN)
    g = data['grid'].reshape(-1).astype(jnp.int32)
    t = data['timestamp'].reshape(-1).astype(jnp.int32) + Vg
    e = data['event'].reshape(-1).astype(jnp.int32) + (Vg + Vt)
    ids = jnp.full((NPAD, 8), -1, dtype=jnp.int32)
    ids = ids.at[:N, 0].set(g).at[:N, 1].set(t).at[:N, 2].set(e)

    apply_dropout = bool(training) and dropout_p > 0.0
    keep_prob = 1.0 - float(dropout_p)

    inputs = [ids]
    in_specs = [pl.BlockSpec((TN, 8), lambda i: (i, 0))]
    if apply_dropout:
        if rng_key is None:
            rng_key = jax.random.PRNGKey(0)
        rnd = jax.random.uniform(rng_key, (NPAD, EPAD), dtype=jnp.float32)
        inputs.append(rnd)
        in_specs.append(pl.BlockSpec((TN, EPAD), lambda i: (i, 0)))
    inputs.append(fused_tab)
    in_specs.append(pl.BlockSpec((KPAD, EPAD), lambda i: (0, 0)))  # resident

    kernel = functools.partial(_gener_embedding_kernel,
                               apply_dropout=apply_dropout,
                               keep_prob=keep_prob)

    out = pl.pallas_call(
        kernel,
        out_shape=jax.ShapeDtypeStruct((NPAD, EPAD), jnp.float32),
        grid=(NPAD // TN,),
        in_specs=in_specs,
        out_specs=pl.BlockSpec((TN, EPAD), lambda i: (i, 0)),
        compiler_params=pltpu.CompilerParams(
            dimension_semantics=("parallel",),
            vmem_limit_bytes=32 * 1024 * 1024,
        ),
    )(*inputs)

    return out[:N, :E].reshape(B, S, E)


def init_params(config, embed_size, key):
    # Vocab sizes exactly as in Gener_embedding.__init__
    grid_num = (config['x_grid_nums'] + 1) * config['y_grid_nums'] + 3
    grid_vocab = grid_num + 1
    time_vocab = config['time_segment'] + 4
    event_vocab = config['event_num'] + 3

    kg, kt, ke = jax.random.split(key, 3)

    def make_table(k, vocab):
        tab = jax.random.normal(k, (vocab, embed_size), dtype=jnp.float32) * 0.02
        # mimic padding_idx=0 (row 0 is zero), typical for these Embedding wrappers
        return tab.at[0].set(0.0)

    return {
        'grid_tab': make_table(kg, grid_vocab),
        'time_tab': make_table(kt, time_vocab),
        'event_tab': make_table(ke, event_vocab),
    }, (grid_vocab, time_vocab, event_vocab)


if __name__ == "__main__":
    config = {'x_grid_nums': 4, 'y_grid_nums': 4,
              'time_segment': 12, 'event_num': 5}
    embed_size = 32
    B, S = 2, 8

    key = jax.random.PRNGKey(0)
    kp, kg, kt, ke, kd = jax.random.split(key, 5)
    params, (gv, tv, ev) = init_params(config, embed_size, kp)

    data = {
        'grid': jax.random.randint(kg, (B, S), 0, gv, dtype=jnp.int32),
        'timestamp': jax.random.randint(kt, (B, S), 0, tv, dtype=jnp.int32),
        'event': jax.random.randint(ke, (B, S), 0, ev, dtype=jnp.int32),
    }

    # Pure-JAX reference of the embedding sum (no dropout).
    ref = (jnp.take(params['grid_tab'], data['grid'], axis=0)
           + jnp.take(params['time_tab'], data['timestamp'], axis=0)
           + jnp.take(params['event_tab'], data['event'], axis=0))

    # 1) Eval mode (dropout is a no-op, like nn.Dropout in eval).
    out_eval = gener_embedding_forward(data, params, train_mode=0,
                                       dropout_p=0.1, training=False)
    out_eval = jax.block_until_ready(out_eval)
    np.testing.assert_allclose(np.asarray(out_eval), np.asarray(ref),
                               rtol=1e-5, atol=1e-5)

    # 2) Training mode with inverted dropout (p=0.1).
    out_train = gener_embedding_forward(data, params, train_mode=0,
                                        dropout_p=0.1, training=True,
                                        rng_key=kd)
    out_train = jax.block_until_ready(out_train)
    assert out_train.shape == (B, S, embed_size)
    # Every element must be either dropped (0) or the reference scaled by 1/keep.
    o = np.asarray(out_train)
    scaled = np.asarray(ref) / 0.9
    ok = np.isclose(o, 0.0, atol=1e-6) | np.isclose(o, scaled, rtol=1e-4, atol=1e-5)
    assert bool(ok.all()), "dropout output is not {0, ref/keep_prob}-valued"

    print("KERNEL_OK")
</pallas_src>

<mosaic_0001>
module attributes {stable_mosaic.version = 11 : i64} {
  func.func @_gener_embedding_kernel(%arg0: i32, %arg1: memref<16x8xi32, #tpu.memory_space<vmem>>, %arg2: memref<128x128xf32, #tpu.memory_space<vmem>>, %arg3: memref<16x128xf32, #tpu.memory_space<vmem>>) attributes {dimension_semantics = [#tpu.dimension_semantics<parallel>], iteration_bounds = array<i64: 1>, scalar_prefetch = 0 : i64, scratch_operands = 0 : i64, tpu.core_type = #tpu.core_type<tc>, window_params = [{transform_indices = @transform_0, window_bounds = array<i64: 16, 8>}, {pipeline_mode = #tpu.pipeline_mode<synchronous>, transform_indices = @transform_1, window_bounds = array<i64: 128, 128>}, {transform_indices = @transform_2, window_bounds = array<i64: 16, 128>}]} {
    %c0 = arith.constant 0 : index
    %c0_0 = arith.constant 0 : index
    %0 = vector.load %arg1[%c0, %c0_0] : memref<16x8xi32, #tpu.memory_space<vmem>>, vector<16x8xi32>
    %1 = tpu.iota {dimensions = array<i32: 1>} : vector<16x128xi32>
    %2 = vector.extract_strided_slice %0 {offsets = [0, 0], sizes = [16, 1], strides = [1, 1]} : vector<16x8xi32> to vector<16x1xi32>
    %3 = vector.broadcast %2 : vector<16x1xi32> to vector<16x128xi32>
    %4 = arith.cmpi eq, %3, %1 : vector<16x128xi32>
    %5 = vector.extract_strided_slice %0 {offsets = [0, 1], sizes = [16, 1], strides = [1, 1]} : vector<16x8xi32> to vector<16x1xi32>
    %6 = vector.broadcast %5 : vector<16x1xi32> to vector<16x128xi32>
    %7 = arith.cmpi eq, %6, %1 : vector<16x128xi32>
    %8 = arith.ori %4, %7 : vector<16x128xi1>
    %9 = vector.extract_strided_slice %0 {offsets = [0, 2], sizes = [16, 1], strides = [1, 1]} : vector<16x8xi32> to vector<16x1xi32>
    %10 = vector.broadcast %9 : vector<16x1xi32> to vector<16x128xi32>
    %11 = arith.cmpi eq, %10, %1 : vector<16x128xi32>
    %12 = arith.ori %8, %11 : vector<16x128xi1>
    %13 = arith.extui %12 : vector<16x128xi1> to vector<16x128xi32>
    %14 = arith.sitofp %13 : vector<16x128xi32> to vector<16x128xf32>
    %c0_1 = arith.constant 0 : index
    %c0_2 = arith.constant 0 : index
    %15 = vector.load %arg2[%c0_1, %c0_2] : memref<128x128xf32, #tpu.memory_space<vmem>>, vector<128x128xf32>
    %cst = arith.constant dense<0.000000e+00> : vector<16x128xf32>
    %16 = tpu.matmul %14, %15, %cst {dimension_numbers = #tpu.dot_dimension_numbers<[1], [0], [0], [1], [0, 0, 1, 1], [], []>} : vector<16x128xf32>, vector<128x128xf32>, vector<16x128xf32> -> vector<16x128xf32>
    %c0_3 = arith.constant 0 : index
    %c0_4 = arith.constant 0 : index
    %17 = vector.load %arg3[%c0_3, %c0_4] : memref<16x128xf32, #tpu.memory_space<vmem>>, vector<16x128xf32>
    tpu.vector_store %arg3[%c0_3, %c0_4], %16 {strides = array<i32>} : memref<16x128xf32, #tpu.memory_space<vmem>>, vector<16x128xf32>,
    return
  }
  func.func @transform_0(%arg0: i32) -> (i32, i32) {
    %c0_i32 = arith.constant 0 : i32
    %c0_i32_0 = arith.constant 0 : i32
    return %arg0, %c0_i32 : i32, i32
  }
  func.func @transform_1(%arg0: i32) -> (i32, i32) {
    %c0_i32 = arith.constant 0 : i32
    %c0_i32_0 = arith.constant 0 : i32
    %c0_i32_1 = arith.constant 0 : i32
    return %c0_i32, %c0_i32_0 : i32, i32
  }
  func.func @transform_2(%arg0: i32) -> (i32, i32) {
    %c0_i32 = arith.constant 0 : i32
    %c0_i32_0 = arith.constant 0 : i32
    return %arg0, %c0_i32 : i32, i32
  }
}

</mosaic_0001>

<bundles_post_ra>
// kernel: tpu_custom_call.1
= control target key start
LH: loop header
LB: loop body
LE: loop exit
PB: predicated region body
PF: predicated region fallthrough
CT: control target
= control target key end

     0   :  { %7 = vsyncpa [#allocation3], 0  ;;  %s328_s0 = inlined_call_operand.vmem [shape: s32[16,8], index: 0, kind: input, shape index: {}]   ;;  %s329_s1 = inlined_call_operand.hbm [shape: f32[128,128], index: 1, kind: input, shape index: {}]   ;;  %s330_s2 = inlined_call_operand.hbm [shape: f32[16,128], index: 2, kind: output, shape index: {}]  }
   0x1   :  { %8 = vsyncpa [#allocation4], 0  ;;  %s287_s9 = smov [#allocation2]  }
   0x2   :  { %s16_s10 = sshll.u32 %s287_s9, 4  ;;  %s17_s10 = int_to_ptr.vmem [resolvable:$true] %s16_s10 }
   0x3   :  { %s251_s11 = scalar_lea.vmem %s17_s10, 2048  ;;  %p256_p1 = scmp.lt.s32.totalorder %s17_s10, %s17_s10 }
   0x4   :  { %p252_p0 = scmp.ne.s32.totalorder %s17_s10, %s251_s11  ;;  %p257_p2 = scmp.lt.s32.totalorder %s251_s11, %s251_s11 }
   0x6   :  { %p258_p3 = por %p257_p2, %p256_p1 }
   0x8   :  { %p259_p4 = pnand %p258_p3, %p252_p0 }
   0xa   :  { %262 = shalt.err (!%p259_p4)
}
   0xb   :  { %s288_s12 = smov 128   ;;  %s289_s13 = smov 8  }
   0xc   :  { %22 = dma.hbm_to_vmem [thread:$0]  %s329_s1, 2048, %s17_s10, [#allocation3], %s288_s12, %s288_s12, %s289_s13  }
   0xd   :  { %283 = dma.done.wait [#allocation3], 2048  }
   0xe   :  { %284 = vsyncadd [#allocation3], 4294965248  ;;  %v290_v0 = vmov 0   ;;  %v27_v1 = vld [vmem:[%s328_s0 + $0x8] sm:$0xff]  ;;  %v26_v2 = vld [vmem:[%s328_s0] sm:$0xff]  ;;  %v291_v5 = vmov 1   ;;  %v28_v23 = vlaneseq }
   0xf   :  { %239 = vset.pattern.permute.xlu1 %v290_v0  ;;  %237 = vset.pattern.permute.xlu0 %v290_v0  ;;  %v77_v3 = vld [vmem:[#allocation2 + $0x78] sm:$0xff]  ;;  %v76_v4 = vld [vmem:[#allocation2 + $0x70] sm:$0xff]  ;;  %v75_v6 = vld [vmem:[#allocation2 + $0x68] sm:$0xff]  ;;  %v292_v8 = vmov 2   ;;  %v293_v29 = vmov 1.0   ;;  %s294_s0 = smov [#allocation5]  }
  0x10   :  { %34 = vperm.xlu1 %239, %v27_v1   ;;  %31 = vperm.xlu0 %237, %v26_v2   ;;  %v74_v7 = vld [vmem:[#allocation2 + $0x60] sm:$0xff]  ;;  %v73_v9 = vld [vmem:[#allocation2 + $0x58] sm:$0xff]  ;;  %v72_v10 = vld [vmem:[#allocation2 + $0x50] sm:$0xff]  ;;  %v29_v24 = vand.u32 127, %v28_v23  ;;  %s160_s1 = sshll.u32 %s294_s0, 4  ;;  %s161_s1 = int_to_ptr.vmem [resolvable:$true] %s160_s1 }
  0x11   :  { %194 = vmatprep.subr.mxu0 %v77_v3  ;;  %v71_v11 = vld [vmem:[#allocation2 + $0x48] sm:$0xff]  ;;  %v70_v12 = vld [vmem:[#allocation2 + $0x40] sm:$0xff]  ;;  %v69_v13 = vld [vmem:[#allocation2 + $0x38] sm:$0xff]  ;;  %s263_s20 = scalar_lea.vmem %s161_s1, 256  ;;  %p268_p6 = scmp.lt.s32.totalorder %s161_s1, %s161_s1 }
  0x12   :  { %195 = vmatpush3.msra.mxu0 %v77_v3  ;;  %v68_v14 = vld [vmem:[#allocation2 + $0x30] sm:$0xff]  ;;  %v67_v15 = vld [vmem:[#allocation2 + $0x28] sm:$0xff]  ;;  %v66_v16 = vld [vmem:[#allocation2 + $0x20] sm:$0xff]  ;;  %p264_p5 = scmp.ne.s32.totalorder %s161_s1, %s263_s20  ;;  %p269_p7 = scmp.lt.s32.totalorder %s263_s20, %s263_s20 }
  0x13   :  { %196 = vmatprep.subr.mxu0 %v76_v4  ;;  %v65_v17 = vld [vmem:[#allocation2 + $0x18] sm:$0xff]  ;;  %v64_v18 = vld [vmem:[#allocation2 + $0x10] sm:$0xff]  ;;  %v63_v19 = vld [vmem:[#allocation2 + $0x8] sm:$0xff] }
  0x14   :  { %240 = vset.pattern.permute.xlu1 %v291_v5  ;;  %238 = vset.pattern.permute.xlu0 %v291_v5  ;;  %v62_v20 = vld [vmem:[#allocation2] sm:$0xff]  ;;  %p270_p8 = por %p269_p7, %p268_p6 }
  0x15   :  { %42 = vperm.xlu1 %240, %v27_v1   ;;  %39 = vperm.xlu0 %238, %v26_v2  }
  0x16   :  { %197 = vmatpush3.msra.mxu0 %v76_v4  ;;  %p271_p9 = pnand %p270_p8, %p264_p5 }
  0x17   :  { %198 = vmatprep.subr.mxu0 %v75_v6 }
  0x18   :  { %199 = vmatpush3.msra.mxu0 %v75_v6 }
  0x19   :  { %241 = vset.pattern.permute.xlu1 %v292_v8  ;;  %242 = vset.pattern.permute.xlu0 %v292_v8 }
  0x1a   :  { %49 = vperm.xlu1 %241, %v26_v2   ;;  %52 = vperm.xlu0 %242, %v27_v1  }
  0x1b   :  { %200 = vmatprep.subr.mxu0 %v74_v7 }
  0x1c   :  { %201 = vmatpush3.msra.mxu0 %v74_v7 }
  0x1d   :  { %202 = vmatprep.subr.mxu0 %v73_v9 }
  0x1e   :  { %203 = vmatpush3.msra.mxu0 %v73_v9 }
  0x1f   :  { %204 = vmatprep.subr.mxu0 %v72_v10 }
  0x20   :  { %205 = vmatpush3.msra.mxu0 %v72_v10 }
  0x21   :  { %206 = vmatprep.subr.mxu0 %v71_v11 }
  0x22   :  { %207 = vmatpush3.msra.mxu0 %v71_v11 }
  0x23   :  { %208 = vmatprep.subr.mxu0 %v70_v12 }
  0x24   :  { %209 = vmatpush3.msra.mxu0 %v70_v12 }
  0x25   :  { %210 = vmatprep.subr.mxu0 %v69_v13 }
  0x26   :  { %211 = vmatpush3.msra.mxu0 %v69_v13 }
  0x27   :  { %212 = vmatprep.subr.mxu0 %v68_v14 }
  0x28   :  { %213 = vmatpush3.msra.mxu0 %v68_v14 }
  0x29   :  { %214 = vmatprep.subr.mxu0 %v67_v15 }
  0x2a   :  { %215 = vmatpush3.msra.mxu0 %v67_v15 }
  0x2b   :  { %216 = vmatprep.subr.mxu0 %v66_v16 }
  0x2c   :  { %217 = vmatpush3.msra.mxu0 %v66_v16 }
  0x2d   :  { %218 = vmatprep.subr.mxu0 %v65_v17 }
  0x2e   :  { %219 = vmatpush3.msra.mxu0 %v65_v17 }
  0x2f   :  { %220 = vmatprep.subr.mxu0 %v64_v18 }
  0x30   :  { %221 = vmatpush3.msra.mxu0 %v64_v18 }
  0x31   :  { %222 = vmatprep.subr.mxu0 %v63_v19 }
  0x32   :  { %223 = vmatpush3.msra.mxu0 %v63_v19 }
  0x33   :  { %224 = vmatprep.subr.mxu0 %v62_v20 }
  0x34   :  { %225 = vmatpush3.msra.mxu0 %v62_v20 }
  0x8b   :  { %v35_v21 = vpop.permute.xlu1 %34  ;;  %v32_v22 = vpop.permute.xlu0 %31 }
  0x8c   :  { %vm37_vm2 = vcmp.eq.s32.totalorder %v35_v21, %v29_v24  ;;  %vm36_vm3 = vcmp.eq.s32.totalorder %v32_v22, %v29_v24 }
  0x90   :  { %v43_v25 = vpop.permute.xlu1 %42  ;;  %v40_v26 = vpop.permute.xlu0 %39 }
  0x91   :  { %vm45_vm0 = vcmp.eq.s32.totalorder %v43_v25, %v29_v24  ;;  %vm44_vm1 = vcmp.eq.s32.totalorder %v40_v26, %v29_v24 }
  0x92   :  { %vm47_vm4 = vmor %vm37_vm2, %vm45_vm0 }
  0x93   :  { %vm46_vm7 = vmor %vm36_vm3, %vm44_vm1 }
  0x95   :  { %v50_v27 = vpop.permute.xlu1 %49  ;;  %v53_v28 = vpop.permute.xlu0 %52 }
  0x96   :  { %vm54_vm5 = vcmp.eq.s32.totalorder %v50_v27, %v29_v24  ;;  %vm55_vm6 = vcmp.eq.s32.totalorder %v53_v28, %v29_v24 }
  0x97   :  { %vm57_vm8 = vmor %vm47_vm4, %vm55_vm6 }
  0x98   :  { %vm56_vm9 = vmor %vm46_vm7, %vm54_vm5 }
  0x99   :  { %226 = vmatprep.mubr.msk.f32.mxu0 %vm56_vm9, %v293_v29 }
  0x9a   :  { %227 = vmatmul.mubr.msk.f32.vlgmr.msra.gmra.mxu0 %vm57_vm8, %v293_v29 }
 0x15a   :  { %v228_v30 = vpop.f32.mrf.mxu0 }
 0x15b   :  { %154 = vst [vmem:[#allocation5 + $0x8] sm:$0xff] %v228_v30 }
 0x15c   :  { %v144_v31 = vpop.f32.mrf.mxu0 }
 0x15d   :  { %153 = vst [vmem:[#allocation5] sm:$0xff] %v144_v31 }
 0x15e   :  { %274 = shalt.err (!%p271_p9)
}
 0x15f   :  { %166 = dma.vmem_to_hbm [thread:$0]  %s161_s1, 256, %s330_s2, [#allocation4], %s288_s12, %s288_s12, %s289_s13  }
 0x160   :  { %285 = dma.done.wait [#allocation4], 256  }
 0x161   :  { %286 = vsyncadd [#allocation4], 4294967040 }
 0x162   :  { %170 = vsyncpa [#allocation3], 1 }
 0x163   :  { %171 = vsyncpa [#allocation4], 1 }

</bundles_post_ra>
